<compile_context>
chip_gen: v7x
topology: tpu7x:2x2x1
jax: 0.10.0
libtpu: 0.0.40
codegen_flags: <defaults>
</compile_context>

<pallas_src>
import functools

import jax
import jax.numpy as jnp
from jax.experimental import pallas as pl
from jax.experimental.pallas import tpu as pltpu


def _dense_proj_kernel(x_ref, w1_ref, b1_ref, w2_ref, b2_ref, o_ref):
    # x_ref:  (tm, pack*D)                 packed input tile (lane-dense)
    # w1_ref: (pack*D, pack*bottleneck)    block-diagonal dense1 weight
    # b1_ref: (1, pack*bottleneck)         f32, pack-tiled bias
    # w2_ref: (pack*bottleneck, pack*L)    block-diagonal dense2 weight (sliced)
    # b2_ref: (1, pack*L)                  f32, pack-tiled bias
    # o_ref:  (tm, pack*L)                 packed output tile (row-major order)
    x = x_ref[...]
    h = jnp.dot(x, w1_ref[...], preferred_element_type=jnp.float32)
    h = jnp.maximum(h + b1_ref[...], 0.0)            # bias + ReLU in f32 (VPU)
    y = jnp.dot(h.astype(w2_ref.dtype), w2_ref[...],
                preferred_element_type=jnp.float32)
    y = y + b2_ref[...]
    o_ref[...] = y.astype(o_ref.dtype)


def _round_up(x: int, m: int) -> int:
    return ((x + m - 1) // m) * m


def _pick_row_tile(packed_rows: int, target: int = 2048) -> int:
    """Tile over the packed-row (sublane) axis.

    2048 packed rows * 128 lanes * 4 B = 1 MiB per x buffer, so per-step DMA
    dwarfs the ~0.35 us fixed step cost on every generation while the whole
    working set stays at a few MiB of VMEM.
    """
    if packed_rows <= target:
        return packed_rows                 # single block == full array dim
    return (target // 8) * 8               # sublane-aligned tile


@functools.partial(jax.jit, static_argnames=("input_len",))
def dense_projection(hidden_states, w1, b1, w2, b2, *, input_len):
    """hidden_states: [B, H, S, head_size] -> [B, H, S, input_len].

    Weights are stored as (in_features, out_features) = PyTorch weight^T:
      w1: (head_size, bottleneck)   b1: (1, bottleneck)
      w2: (bottleneck, max_seq_len) b2: (1, max_seq_len)
    """
    B, H, S, D = hidden_states.shape
    bottleneck = w1.shape[1]
    rows = B * H * S
    cdt = hidden_states.dtype
    itemsize = jnp.dtype(cdt).itemsize

    # --- Row packing factor: how many D-wide rows fit in one 128-lane row. ---
    pack = 128 // D if (D <= 128 and 128 % D == 0) else 1
    if pack > 1 and rows % pack != 0:
        pack = 1                           # fall back to unpacked layout

    prows = rows // pack
    x2d = hidden_states.reshape(prows, pack * D)      # contiguous reshape

    # --- Weight prep: slice dense2, build block-diagonal weights, tile biases.
    eye = jnp.eye(pack, dtype=cdt)
    w1_bd = jnp.kron(eye, w1.astype(cdt))                       # (pack*D, pack*bn)
    w2_bd = jnp.kron(eye, w2[:, :input_len].astype(cdt))        # (pack*bn, pack*L)
    b1_t = jnp.tile(b1.reshape(1, bottleneck).astype(jnp.float32), (1, pack))
    b2_t = jnp.tile(b2[:, :input_len].reshape(1, input_len).astype(jnp.float32),
                    (1, pack))

    tm = _pick_row_tile(prows)
    grid = (pl.cdiv(prows, tm),)

    in_cols = pack * D
    out_cols = pack * input_len
    bn_cols = pack * bottleneck

    # --- Padding-aware cost estimate (truthful HBM traffic). ---
    cost = pl.CostEstimate(
        flops=2 * rows * (D * bottleneck + bottleneck * input_len),
        transcendentals=0,
        bytes_accessed=(prows * _round_up(in_cols, 128) * itemsize
                        + prows * _round_up(out_cols, 128) * itemsize
                        + (in_cols * bn_cols + bn_cols * out_cols) * itemsize
                        + (bn_cols + out_cols) * 4),
    )

    # --- VMEM budget: 2x double-buffered x + out blocks, f32 intermediate,
    #     resident weights; generous headroom, capped well under v7x's 64 MiB.
    vmem_est = (2 * tm * _round_up(in_cols, 128) * itemsize
                + 2 * tm * _round_up(out_cols, 128) * itemsize
                + tm * _round_up(bn_cols, 128) * 4
                + (in_cols * bn_cols + bn_cols * out_cols) * itemsize
                + 2 * 128 * 4)
    vmem_limit = int(min(max(2 * vmem_est, 16 << 20), 64 << 20))

    out_p = pl.pallas_call(
        _dense_proj_kernel,
        out_shape=jax.ShapeDtypeStruct((prows, out_cols), cdt),
        grid_spec=pltpu.PrefetchScalarGridSpec(
            num_scalar_prefetch=0,
            grid=grid,
            in_specs=[
                pl.BlockSpec((tm, in_cols), lambda i: (i, 0)),
                pl.BlockSpec((in_cols, bn_cols), lambda i: (0, 0)),
                pl.BlockSpec((1, bn_cols), lambda i: (0, 0)),
                pl.BlockSpec((bn_cols, out_cols), lambda i: (0, 0)),
                pl.BlockSpec((1, out_cols), lambda i: (0, 0)),
            ],
            out_specs=pl.BlockSpec((tm, out_cols), lambda i: (i, 0)),
        ),
        compiler_params=pltpu.CompilerParams(
            dimension_semantics=("parallel",),
            vmem_limit_bytes=vmem_limit,
        ),
        cost_estimate=cost,
    )(x2d, w1_bd, b1_t, w2_bd, b2_t)

    # Packed output is already in natural row-major order: pure reshape,
    # no transpose, no extra HBM pass.
    return out_p.reshape(B, H, S, input_len)


def _reference(hidden_states, w1, b1, w2, b2, input_len):
    h = jnp.maximum(hidden_states @ w1 + b1[0], 0.0)
    y = h @ w2 + b2[0]
    return y[:, :, :, :input_len]


if __name__ == "__main__":
    # Module hyperparameters (small, consistent with the forward pass).
    max_seq_len = 8
    attention_head_size = 32
    bottleneck_size = 16

    key = jax.random.PRNGKey(0)
    kx, k1, k2, k3, k4, kx2 = jax.random.split(key, 6)

    # Deterministic parameters (PyTorch Linear shapes, stored transposed).
    w1 = jax.random.normal(k1, (attention_head_size, bottleneck_size),
                           dtype=jnp.float32) * 0.05
    b1 = jax.random.normal(k2, (1, bottleneck_size), dtype=jnp.float32) * 0.05
    w2 = jax.random.normal(k3, (bottleneck_size, max_seq_len),
                           dtype=jnp.float32) * 0.05
    b2 = jax.random.normal(k4, (1, max_seq_len), dtype=jnp.float32) * 0.05

    # Case 1: small input, single block (rows = 64 -> 16 packed rows).
    B, H, S = 2, 4, 8
    input_len = 6
    x = jax.random.normal(kx, (B, H, S, attention_head_size), dtype=jnp.float32)

    out = dense_projection(x, w1, b1, w2, b2, input_len=input_len)
    out = jax.block_until_ready(out)
    ref = _reference(x, w1, b1, w2, b2, input_len)
    assert out.shape == (B, H, S, input_len), out.shape
    assert jnp.allclose(out, ref, atol=1e-5, rtol=1e-5), "mismatch vs reference"

    # Case 2: larger row count (rows = 800 -> 200 packed rows, single block,
    # full-extent second-minor dim exercising the non-multiple-of-8 path).
    B2, H2, S2 = 2, 4, 100
    x2 = jax.random.normal(kx2, (B2, H2, S2, attention_head_size),
                           dtype=jnp.float32)
    out2 = dense_projection(x2, w1, b1, w2, b2, input_len=input_len)
    out2 = jax.block_until_ready(out2)
    ref2 = _reference(x2, w1, b1, w2, b2, input_len)
    assert out2.shape == (B2, H2, S2, input_len), out2.shape
    assert jnp.allclose(out2, ref2, atol=1e-5, rtol=1e-5), "mismatch (packed)"

    print("KERNEL_OK")
</pallas_src>

<mosaic_0001>
module attributes {stable_mosaic.version = 11 : i64} {
  func.func @_dense_proj_kernel(%arg0: i32, %arg1: memref<16x128xf32, #tpu.memory_space<vmem>>, %arg2: memref<128x64xf32, #tpu.memory_space<vmem>>, %arg3: memref<1x64xf32, #tpu.memory_space<vmem>>, %arg4: memref<64x24xf32, #tpu.memory_space<vmem>>, %arg5: memref<1x24xf32, #tpu.memory_space<vmem>>, %arg6: memref<16x24xf32, #tpu.memory_space<vmem>>) attributes {dimension_semantics = [#tpu.dimension_semantics<parallel>], iteration_bounds = array<i64: 1>, scalar_prefetch = 0 : i64, scratch_operands = 0 : i64, tpu.core_type = #tpu.core_type<tc>, window_params = [{transform_indices = @transform_0, window_bounds = array<i64: 16, 128>}, {pipeline_mode = #tpu.pipeline_mode<synchronous>, transform_indices = @transform_1, window_bounds = array<i64: 128, 64>}, {pipeline_mode = #tpu.pipeline_mode<synchronous>, transform_indices = @transform_2, window_bounds = array<i64: 1, 64>}, {pipeline_mode = #tpu.pipeline_mode<synchronous>, transform_indices = @transform_3, window_bounds = array<i64: 64, 24>}, {pipeline_mode = #tpu.pipeline_mode<synchronous>, transform_indices = @transform_4, window_bounds = array<i64: 1, 24>}, {transform_indices = @transform_5, window_bounds = array<i64: 16, 24>}]} {
    %c0 = arith.constant 0 : index
    %c0_0 = arith.constant 0 : index
    %0 = vector.load %arg1[%c0, %c0_0] : memref<16x128xf32, #tpu.memory_space<vmem>>, vector<16x128xf32>
    %c0_1 = arith.constant 0 : index
    %c0_2 = arith.constant 0 : index
    %1 = vector.load %arg2[%c0_1, %c0_2] : memref<128x64xf32, #tpu.memory_space<vmem>>, vector<128x64xf32>
    %cst = arith.constant dense<0.000000e+00> : vector<16x64xf32>
    %2 = tpu.matmul %0, %1, %cst {dimension_numbers = #tpu.dot_dimension_numbers<[1], [0], [0], [1], [0, 0, 1, 1], [], []>} : vector<16x128xf32>, vector<128x64xf32>, vector<16x64xf32> -> vector<16x64xf32>
    %c0_3 = arith.constant 0 : index
    %c0_4 = arith.constant 0 : index
    %3 = vector.load %arg3[%c0_3, %c0_4] : memref<1x64xf32, #tpu.memory_space<vmem>>, vector<1x64xf32>
    %4 = vector.broadcast %3 : vector<1x64xf32> to vector<16x64xf32>
    %5 = arith.addf %2, %4 : vector<16x64xf32>
    %cst_5 = arith.constant 0.000000e+00 : f32
    %6 = vector.broadcast %cst_5 : f32 to vector<16x64xf32>
    %7 = arith.maximumf %5, %6 : vector<16x64xf32>
    %c0_6 = arith.constant 0 : index
    %c0_7 = arith.constant 0 : index
    %8 = vector.load %arg4[%c0_6, %c0_7] : memref<64x24xf32, #tpu.memory_space<vmem>>, vector<64x24xf32>
    %cst_8 = arith.constant dense<0.000000e+00> : vector<16x24xf32>
    %9 = tpu.matmul %7, %8, %cst_8 {dimension_numbers = #tpu.dot_dimension_numbers<[1], [0], [0], [1], [0, 0, 1, 1], [], []>} : vector<16x64xf32>, vector<64x24xf32>, vector<16x24xf32> -> vector<16x24xf32>
    %c0_9 = arith.constant 0 : index
    %c0_10 = arith.constant 0 : index
    %10 = vector.load %arg5[%c0_9, %c0_10] : memref<1x24xf32, #tpu.memory_space<vmem>>, vector<1x24xf32>
    %11 = vector.broadcast %10 : vector<1x24xf32> to vector<16x24xf32>
    %12 = arith.addf %9, %11 : vector<16x24xf32>
    %c0_11 = arith.constant 0 : index
    %c0_12 = arith.constant 0 : index
    %13 = vector.load %arg6[%c0_11, %c0_12] : memref<16x24xf32, #tpu.memory_space<vmem>>, vector<16x24xf32>
    tpu.vector_store %arg6[%c0_11, %c0_12], %12 {strides = array<i32>} : memref<16x24xf32, #tpu.memory_space<vmem>>, vector<16x24xf32>,
    return
  }
  func.func @transform_0(%arg0: i32) -> (i32, i32) {
    %c0_i32 = arith.constant 0 : i32
    %c0_i32_0 = arith.constant 0 : i32
    return %arg0, %c0_i32 : i32, i32
  }
  func.func @transform_1(%arg0: i32) -> (i32, i32) {
    %c0_i32 = arith.constant 0 : i32
    %c0_i32_0 = arith.constant 0 : i32
    %c0_i32_1 = arith.constant 0 : i32
    return %c0_i32, %c0_i32_0 : i32, i32
  }
  func.func @transform_2(%arg0: i32) -> (i32, i32) {
    %c0_i32 = arith.constant 0 : i32
    %c0_i32_0 = arith.constant 0 : i32
    %c0_i32_1 = arith.constant 0 : i32
    return %c0_i32, %c0_i32_0 : i32, i32
  }
  func.func @transform_3(%arg0: i32) -> (i32, i32) {
    %c0_i32 = arith.constant 0 : i32
    %c0_i32_0 = arith.constant 0 : i32
    %c0_i32_1 = arith.constant 0 : i32
    return %c0_i32, %c0_i32_0 : i32, i32
  }
  func.func @transform_4(%arg0: i32) -> (i32, i32) {
    %c0_i32 = arith.constant 0 : i32
    %c0_i32_0 = arith.constant 0 : i32
    %c0_i32_1 = arith.constant 0 : i32
    return %c0_i32, %c0_i32_0 : i32, i32
  }
  func.func @transform_5(%arg0: i32) -> (i32, i32) {
    %c0_i32 = arith.constant 0 : i32
    %c0_i32_0 = arith.constant 0 : i32
    return %arg0, %c0_i32 : i32, i32
  }
}

</mosaic_0001>

<bundles_post_ra>
// kernel: dense_projection.1
= control target key start
LH: loop header
LB: loop body
LE: loop exit
PB: predicated region body
PF: predicated region fallthrough
CT: control target
= control target key end

     0   :  { %vm137_vm0 = vcmask 523264   ;;  %vm219_vm1 = vcmask 195584   ;;  %s480_s1 = inlined_call_operand.vmem [shape: f32[128,64], index: 1, kind: input, shape index: {}]   ;;  %s481_s0 = inlined_call_operand.vmem [shape: f32[16,128], index: 0, kind: input, shape index: {}]   ;;  %s482_s3 = inlined_call_operand.vmem [shape: f32[64,24], index: 3, kind: input, shape index: {}]   ;;  %s483_s2 = inlined_call_operand.vmem [shape: f32[1,64], index: 2, kind: input, shape index: {}]   ;;  %s484_s4 = inlined_call_operand.vmem [shape: f32[1,24], index: 4, kind: input, shape index: {}]   ;;  %s485_s5 = inlined_call_operand.vmem [shape: f32[16,24], index: 5, kind: output, shape index: {}]  }
   0x1   :  { %v22_v0 = vld [vmem:[%s480_s1] sm:$0xff]  ;;  %v23_v1 = vld [vmem:[%s480_s1 + $0x8] sm:$0xff]  ;;  %v24_v2 = vld [vmem:[%s480_s1 + $0x10] sm:$0xff] }
   0x2   :  { %v312_v3 = vpack.c.bf16 %v23_v1, %v22_v0  ;;  %v25_v4 = vld [vmem:[%s480_s1 + $0x18] sm:$0xff]  ;;  %v26_v6 = vld [vmem:[%s480_s1 + $0x20] sm:$0xff]  ;;  %v27_v7 = vld [vmem:[%s480_s1 + $0x28] sm:$0xff] }
   0x3   :  { %v316_v5 = vpack.c.bf16 %v25_v4, %v24_v2  ;;  %v320_v8 = vpack.c.bf16 %v27_v7, %v26_v6  ;;  %v28_v9 = vld [vmem:[%s480_s1 + $0x30] sm:$0xff]  ;;  %v29_v10 = vld [vmem:[%s480_s1 + $0x38] sm:$0xff]  ;;  %v20_v11 = vld [vmem:[%s481_s0] sm:$0xff] }
   0x4   :  { %313 = vmatprep.subr.bf16.mxu0 %v312_v3  ;;  %290 = vmatprep.mubr.f32.mxu0 %v20_v11  ;;  %v122_v12 = vld [vmem:[%s482_s3] sm:$0xff]  ;;  %v123_v13 = vld [vmem:[%s482_s3 + $0x8] sm:$0xff]  ;;  %v124_v14 = vld [vmem:[%s482_s3 + $0x10] sm:$0xff]  ;;  %v324_v20 = vpack.c.bf16 %v29_v10, %v28_v9 }
   0x5   :  { %315 = vmatpush3.bf16.msra.mxu0 %v312_v3  ;;  %v344_v15 = vpack.c.bf16 %v123_v13, %v122_v12  ;;  %v125_v16 = vld [vmem:[%s482_s3 + $0x18] sm:$0xff]  ;;  %v126_v18 = vld [vmem:[%s482_s3 + $0x20] sm:$0xff]  ;;  %v127_v19 = vld [vmem:[%s482_s3 + $0x28] sm:$0xff] }
   0x6   :  { %317 = vmatprep.subr.bf16.mxu0 %v316_v5  ;;  %v348_v17 = vpack.c.bf16 %v125_v16, %v124_v14  ;;  %v30_v21 = vld [vmem:[%s480_s1 + $0x40] sm:$0xff]  ;;  %v31_v22 = vld [vmem:[%s480_s1 + $0x48] sm:$0xff]  ;;  %v352_v23 = vpack.c.bf16 %v127_v19, %v126_v18  ;;  %v32_v25 = vld [vmem:[%s480_s1 + $0x50] sm:$0xff] }
   0x7   :  { %345 = vmatprep.subr.bf16.mxu1 %v344_v15  ;;  %v328_v24 = vpack.c.bf16 %v31_v22, %v30_v21  ;;  %v33_v26 = vld [vmem:[%s480_s1 + $0x58] sm:$0xff]  ;;  %v34_v28 = vld [vmem:[%s480_s1 + $0x60] sm:$0xff]  ;;  %v35_v29 = vld [vmem:[%s480_s1 + $0x68] sm:$0xff] }
   0x8   :  { %347 = vmatpush3.bf16.msra.mxu1 %v344_v15  ;;  %v332_v27 = vpack.c.bf16 %v33_v26, %v32_v25  ;;  %v336_v30 = vpack.c.bf16 %v35_v29, %v34_v28  ;;  %v36_v31 = vld [vmem:[%s480_s1 + $0x70] sm:$0xff]  ;;  %v37_v32 = vld [vmem:[%s480_s1 + $0x78] sm:$0xff]  ;;  %v21_v34 = vld [vmem:[%s481_s0 + $0x8] sm:$0xff] }
   0x9   :  { %319 = vmatpush3.bf16.msra.mxu0 %v316_v5  ;;  %349 = vmatprep.subr.bf16.mxu1 %v348_v17  ;;  %v340_v33 = vpack.c.bf16 %v37_v32, %v36_v31  ;;  %v128_v35 = vld [vmem:[%s482_s3 + $0x30] sm:$0xff]  ;;  %v129_v36 = vld [vmem:[%s482_s3 + $0x38] sm:$0xff]  ;;  %v226_v38 = vld [vmem:[%s483_s2] ss:$0 sm:$0xff] }
   0xa   :  { %321 = vmatprep.subr.bf16.mxu0 %v320_v8  ;;  %v356_v37 = vpack.c.bf16 %v129_v36, %v128_v35  ;;  %v227_v45 = vld [vmem:[%s484_s4] ss:$0 sm:$0xff] }
   0xc   :  { %351 = vmatpush3.bf16.msra.mxu1 %v348_v17 }
   0xd   :  { %323 = vmatpush3.bf16.msra.mxu0 %v320_v8  ;;  %353 = vmatprep.subr.bf16.mxu1 %v352_v23 }
   0xe   :  { %325 = vmatprep.subr.bf16.mxu0 %v324_v20 }
  0x10   :  { %355 = vmatpush3.bf16.msra.mxu1 %v352_v23 }
  0x11   :  { %327 = vmatpush3.bf16.msra.mxu0 %v324_v20  ;;  %357 = vmatprep.subr.bf16.mxu1 %v356_v37 }
  0x12   :  { %329 = vmatprep.subr.bf16.mxu0 %v328_v24 }
  0x14   :  { %359 = vmatpush3.bf16.msra.mxu1 %v356_v37 }
  0x15   :  { %331 = vmatpush3.bf16.msra.mxu0 %v328_v24 }
  0x16   :  { %333 = vmatprep.subr.bf16.mxu0 %v332_v27 }
  0x19   :  { %335 = vmatpush3.bf16.msra.mxu0 %v332_v27 }
  0x1a   :  { %337 = vmatprep.subr.bf16.mxu0 %v336_v30 }
  0x1d   :  { %339 = vmatpush3.bf16.msra.mxu0 %v336_v30 }
  0x1e   :  { %341 = vmatprep.subr.bf16.mxu0 %v340_v33 }
  0x21   :  { %343 = vmatpush3.bf16.msra.mxu0 %v340_v33 }
  0x24   :  { %291 = vmatmul.mubr.f32.vlgmr.msra.gmra.mrb[0].mxu0 %v21_v34 }
  0xf7   :  { %v292_v39 = vpop.f32.mrb[0].mxu0 }
  0xf8   :  { %v117_v40 = vadd.f32 %v292_v39, %v226_v38  ;;  %v111_v41 = vpop.f32.mrb[1].mxu0 }
  0xf9   :  { %v112_v42 = vadd.f32 %v226_v38, %v111_v41 }
  0xfa   :  { %v121_v44 = vmax.f32 %v117_v40, 0.0 }
  0xfb   :  { %v120_v43 = vmax.f32 %v112_v42, 0.0 }
  0xfd   :  { %309 = vmatprep.mubr.msk.f32.mxu1 %vm137_vm0, %v120_v43 }
  0xfe   :  { %310 = vmatmul.mubr.msk.f32.vlgmr.msra.gmra.mrb[0].mxu1 %vm137_vm0, %v121_v44 }
 0x1d1   :  { %v311_v46 = vpop.f32.mrb[0].mxu1 }
 0x1d2   :  { %v216_v47 = vadd.f32 %v311_v46, %v227_v45  ;;  %v210_v48 = vpop.f32.mrb[1].mxu1 }
 0x1d3   :  { %v211_v49 = vadd.f32 %v227_v45, %v210_v48 }
 0x1d4   :  { %221 = vst.msk [vmem:[%s485_s5 + $0x8] sm:$0xff] %vm219_vm1, %v216_v47 }
 0x1d5   :  { %220 = vst.msk [vmem:[%s485_s5] sm:$0xff] %vm219_vm1, %v211_v49 }

</bundles_post_ra>
